<compile_context>
chip_gen: v7x
topology: tpu7x:2x2x1
jax: 0.10.0
libtpu: 0.0.40
codegen_flags: <defaults>
</compile_context>

<pallas_src>
import jax
import jax.numpy as jnp
from jax.experimental import pallas as pl
from jax.experimental.pallas import tpu as pltpu


def _round_up(n, m):
    return ((n + m - 1) // m) * m


def _disc_kernel(x_ref, w1_ref, t1_ref, w2_ref, t2_ref, w3_ref, b3_ref, o_ref):
    # Layer 1: x @ (w1 * s1) on the MXU (bf16 operands, f32 accumulate),
    # then folded bias/BN shift + LeakyReLU(0.2).  Dropout = identity (eval).
    h = jnp.dot(x_ref[...], w1_ref[...], preferred_element_type=jnp.float32)
    h = h + t1_ref[...]
    h = jnp.where(h > 0, h, 0.2 * h)

    # Layer 2: same pattern; cast activations to bf16 only for the MXU operands.
    h = jnp.dot(h.astype(jnp.bfloat16), w2_ref[...],
                preferred_element_type=jnp.float32)
    h = h + t2_ref[...]
    h = jnp.where(h > 0, h, 0.2 * h)

    # Layer 3 (out_features = 1): VPU multiply + lane reduction instead of an
    # N=1 MXU push (which would waste 127/128+ of the systolic array).
    z = jnp.sum(h * w3_ref[...], axis=-1, keepdims=True) + b3_ref[...]

    # Sigmoid: exp on the EUP, reciprocal on the EUP (approx) -> frees VALU.
    o_ref[...] = pl.reciprocal(1.0 + jnp.exp(-z), approx=True)


def prepare_params(params, eps=1e-5):
    """One-time (per parameter update) fold + pad + bf16 cast of the weights.

    Returns (w1p, t1p, w2p, t2p, w3p, b3p):
      w1p : (Dp,  H1p) bf16  -- w1 with BN1 scale folded into columns, zero-padded
      t1p : (1,   H1p) f32   -- (b1 - rm1) * s1 + beta1, zero-padded
      w2p : (H1p, H2p) bf16  -- w2 with BN2 scale folded, zero-padded both dims
      t2p : (1,   H2p) f32
      w3p : (1,   H2p) f32   -- final weight as a row (for VPU mul + reduce)
      b3p : (1, 1)     f32
    """
    (w1, b1, g1, be1, rm1, rv1,
     w2, b2, g2, be2, rm2, rv2,
     w3, b3) = params

    D, h1 = w1.shape
    h2 = w2.shape[1]

    s1 = g1 / jnp.sqrt(rv1 + eps)
    t1 = (b1 - rm1) * s1 + be1
    s2 = g2 / jnp.sqrt(rv2 + eps)
    t2 = (b2 - rm2) * s2 + be2

    # Fold BN scale into the weight columns.
    w1f = w1 * s1[None, :]
    w2f = w2 * s2[None, :]

    Dp = _round_up(D, 128)
    H1p = _round_up(h1, 128)
    H2p = _round_up(h2, 128)

    w1p = jnp.zeros((Dp, H1p), jnp.float32).at[:D, :h1].set(w1f).astype(jnp.bfloat16)
    t1p = jnp.zeros((1, H1p), jnp.float32).at[0, :h1].set(t1)
    w2p = jnp.zeros((H1p, H2p), jnp.float32).at[:h1, :h2].set(w2f).astype(jnp.bfloat16)
    t2p = jnp.zeros((1, H2p), jnp.float32).at[0, :h2].set(t2)
    w3p = jnp.zeros((1, H2p), jnp.float32).at[0, :h2].set(w3[:, 0])
    b3p = b3.reshape(1, 1).astype(jnp.float32)
    return (w1p, t1p, w2p, t2p, w3p, b3p)


def discriminator_forward(x, prep):
    """x: (B, C, H, W) float32; prep = prepare_params(params). Returns (B, 1) f32."""
    w1p, t1p, w2p, t2p, w3p, b3p = prep
    B = x.shape[0]
    D = x.shape[1] * x.shape[2] * x.shape[3]
    Dp, H1p = w1p.shape
    H2p = w2p.shape[1]

    # Batch tile: big enough to amortize per-step overhead, small enough to keep
    # the double-buffered x tile comfortably inside v7x's 64 MiB VMEM.
    TM = 256 if B >= 256 else _round_up(max(B, 8), 8)
    Bp = _round_up(B, TM)
    nb = Bp // TM

    # x.view(-1, C*H*W) equivalent; cast to bf16 (halves the x DMA bytes) and
    # zero-pad batch/feature dims to the padded kernel shapes.
    x2d = x.reshape(B, D).astype(jnp.bfloat16)
    x2d = jnp.pad(x2d, ((0, Bp - B), (0, Dp - D)))

    in_specs = [
        pl.BlockSpec((TM, Dp), lambda i: (i, 0)),    # x: tiled over batch
        pl.BlockSpec((Dp, H1p), lambda i: (0, 0)),   # weights: VMEM-resident
        pl.BlockSpec((1, H1p), lambda i: (0, 0)),
        pl.BlockSpec((H1p, H2p), lambda i: (0, 0)),
        pl.BlockSpec((1, H2p), lambda i: (0, 0)),
        pl.BlockSpec((1, H2p), lambda i: (0, 0)),
        pl.BlockSpec((1, 1), lambda i: (0, 0)),
    ]
    out_specs = pl.BlockSpec((TM, 1), lambda i: (i, 0))

    # VMEM budget: resident weights + double-buffered x/out tiles (+ headroom).
    est = (Dp * H1p * 2 + H1p * H2p * 2              # bf16 weights
           + 4 * (H1p + 2 * H2p + 1)                 # f32 shifts / w3 row / bias
           + 2 * TM * Dp * 2                         # x tile, double-buffered bf16
           + 2 * TM * 4)                             # out tile, double-buffered f32
    vmem_limit = int(max(32 * 1024 * 1024, 2 * est))

    out = pl.pallas_call(
        _disc_kernel,
        out_shape=jax.ShapeDtypeStruct((Bp, 1), jnp.float32),
        grid=(nb,),
        in_specs=in_specs,
        out_specs=out_specs,
        compiler_params=pltpu.CompilerParams(
            dimension_semantics=("parallel",),
            vmem_limit_bytes=vmem_limit),
    )(x2d, w1p, t1p, w2p, t2p, w3p, b3p)
    return out[:B]


def init_params(key, z_size, input_channel, input_height, input_width):
    D = input_channel * input_height * input_width
    h1 = 8 * z_size
    h2 = 2 * z_size
    ks = jax.random.split(key, 8)

    def uni(k, shape, fan_in):
        lim = 1.0 / jnp.sqrt(float(fan_in))
        return jax.random.uniform(k, shape, jnp.float32, -lim, lim)

    w1 = uni(ks[0], (D, h1), D)
    b1 = uni(ks[1], (h1,), D)
    w2 = uni(ks[2], (h1, h2), h1)
    b2 = uni(ks[3], (h2,), h1)
    w3 = uni(ks[4], (h2, 1), h2)
    b3 = uni(ks[5], (1,), h2)

    # BatchNorm affine params + (non-trivial) running stats, deterministic.
    g1 = jnp.ones((h1,), jnp.float32)
    be1 = jnp.zeros((h1,), jnp.float32)
    rm1 = 0.1 * jax.random.normal(ks[6], (h1,), jnp.float32)
    rv1 = jnp.ones((h1,), jnp.float32) + 0.1

    g2 = jnp.ones((h2,), jnp.float32)
    be2 = jnp.zeros((h2,), jnp.float32)
    rm2 = 0.1 * jax.random.normal(ks[7], (h2,), jnp.float32)
    rv2 = jnp.ones((h2,), jnp.float32) + 0.1

    return (w1, b1, g1, be1, rm1, rv1,
            w2, b2, g2, be2, rm2, rv2,
            w3, b3)


def _reference_forward(x, params):
    """Pure-JAX f32 reference of the eval-mode PyTorch forward."""
    (w1, b1, g1, be1, rm1, rv1,
     w2, b2, g2, be2, rm2, rv2,
     w3, b3) = params
    eps = 1e-5
    B = x.shape[0]
    h = x.reshape(B, -1) @ w1 + b1
    h = (h - rm1) / jnp.sqrt(rv1 + eps) * g1 + be1
    h = jnp.where(h > 0, h, 0.2 * h)
    h = h @ w2 + b2
    h = (h - rm2) / jnp.sqrt(rv2 + eps) * g2 + be2
    h = jnp.where(h > 0, h, 0.2 * h)
    z = h @ w3 + b3
    return jax.nn.sigmoid(z)


def _matched_reference(x, prep):
    """Pure-JAX reference using the SAME folded/padded bf16 params as the kernel."""
    w1p, t1p, w2p, t2p, w3p, b3p = prep
    B = x.shape[0]
    D = x.shape[1] * x.shape[2] * x.shape[3]
    Dp = w1p.shape[0]
    xb = jnp.pad(x.reshape(B, D).astype(jnp.bfloat16), ((0, 0), (0, Dp - D)))
    h = jnp.dot(xb, w1p, preferred_element_type=jnp.float32) + t1p
    h = jnp.where(h > 0, h, 0.2 * h)
    h = jnp.dot(h.astype(jnp.bfloat16), w2p, preferred_element_type=jnp.float32) + t2p
    h = jnp.where(h > 0, h, 0.2 * h)
    z = jnp.sum(h * w3p, axis=-1, keepdims=True) + b3p
    return 1.0 / (1.0 + jnp.exp(-z))


if __name__ == "__main__":
    z_size = 16
    input_channel, input_height, input_width = 4, 16, 16
    batch = 8

    key = jax.random.PRNGKey(0)
    kx, kp = jax.random.split(key)
    x = jax.random.normal(
        kx, (batch, input_channel, input_height, input_width), jnp.float32)
    params = init_params(kp, z_size, input_channel, input_height, input_width)

    prep = prepare_params(params)                 # once per parameter update
    fwd = jax.jit(discriminator_forward)

    out = jax.block_until_ready(fwd(x, prep))
    assert out.shape == (batch, 1)

    # Tight check vs a reference with identical bf16 quantization / folding.
    ref_matched = _matched_reference(x, prep)
    assert jnp.allclose(out, ref_matched, atol=5e-3, rtol=5e-3), (
        jnp.max(jnp.abs(out - ref_matched)))

    # Loose check vs the full-f32 eval-mode PyTorch semantics (bf16 weight
    # quantization introduces a small, bounded deviation).
    ref_f32 = _reference_forward(x, params)
    assert jnp.allclose(out, ref_f32, atol=2e-2, rtol=2e-2), (
        jnp.max(jnp.abs(out - ref_f32)))

    print("KERNEL_OK")
</pallas_src>

<mosaic_0001>
module attributes {stable_mosaic.version = 11 : i64} {
  func.func @_disc_kernel(%arg0: i32, %arg1: memref<8x1024xbf16, #tpu.memory_space<vmem>>, %arg2: memref<1024x128xbf16, #tpu.memory_space<vmem>>, %arg3: memref<1x128xf32, #tpu.memory_space<vmem>>, %arg4: memref<128x128xbf16, #tpu.memory_space<vmem>>, %arg5: memref<1x128xf32, #tpu.memory_space<vmem>>, %arg6: memref<1x128xf32, #tpu.memory_space<vmem>>, %arg7: memref<1x1xf32, #tpu.memory_space<vmem>>, %arg8: memref<8x1xf32, #tpu.memory_space<vmem>>) attributes {dimension_semantics = [#tpu.dimension_semantics<parallel>], iteration_bounds = array<i64: 1>, scalar_prefetch = 0 : i64, scratch_operands = 0 : i64, tpu.core_type = #tpu.core_type<tc>, window_params = [{transform_indices = @transform_0, window_bounds = array<i64: 8, 1024>}, {pipeline_mode = #tpu.pipeline_mode<synchronous>, transform_indices = @transform_1, window_bounds = array<i64: 1024, 128>}, {pipeline_mode = #tpu.pipeline_mode<synchronous>, transform_indices = @transform_2, window_bounds = array<i64: 1, 128>}, {pipeline_mode = #tpu.pipeline_mode<synchronous>, transform_indices = @transform_3, window_bounds = array<i64: 128, 128>}, {pipeline_mode = #tpu.pipeline_mode<synchronous>, transform_indices = @transform_4, window_bounds = array<i64: 1, 128>}, {pipeline_mode = #tpu.pipeline_mode<synchronous>, transform_indices = @transform_5, window_bounds = array<i64: 1, 128>}, {pipeline_mode = #tpu.pipeline_mode<synchronous>, transform_indices = @transform_6, window_bounds = array<i64: 1, 1>}, {transform_indices = @transform_7, window_bounds = array<i64: 8, 1>}]} {
    %c0 = arith.constant 0 : index
    %c0_0 = arith.constant 0 : index
    %0 = vector.load %arg1[%c0, %c0_0] : memref<8x1024xbf16, #tpu.memory_space<vmem>>, vector<8x1024xbf16>
    %c0_1 = arith.constant 0 : index
    %c0_2 = arith.constant 0 : index
    %1 = vector.load %arg2[%c0_1, %c0_2] : memref<1024x128xbf16, #tpu.memory_space<vmem>>, vector<1024x128xbf16>
    %cst = arith.constant dense<0.000000e+00> : vector<8x128xf32>
    %2 = tpu.matmul %0, %1, %cst {dimension_numbers = #tpu.dot_dimension_numbers<[1], [0], [0], [1], [0, 0, 1, 1], [], []>} : vector<8x1024xbf16>, vector<1024x128xbf16>, vector<8x128xf32> -> vector<8x128xf32>
    %c0_3 = arith.constant 0 : index
    %c0_4 = arith.constant 0 : index
    %3 = vector.load %arg3[%c0_3, %c0_4] : memref<1x128xf32, #tpu.memory_space<vmem>>, vector<1x128xf32>
    %4 = vector.broadcast %3 : vector<1x128xf32> to vector<8x128xf32>
    %5 = arith.addf %2, %4 : vector<8x128xf32>
    %cst_5 = arith.constant 0.000000e+00 : f32
    %6 = vector.broadcast %cst_5 : f32 to vector<8x128xf32>
    %7 = arith.cmpf ogt, %5, %6 : vector<8x128xf32>
    %cst_6 = arith.constant 2.000000e-01 : f32
    %8 = vector.broadcast %cst_6 : f32 to vector<8x128xf32>
    %9 = arith.mulf %8, %5 : vector<8x128xf32>
    %10 = arith.select %7, %5, %9 : vector<8x128xi1>, vector<8x128xf32>
    %11 = arith.truncf %10 : vector<8x128xf32> to vector<8x128xbf16>
    %c0_7 = arith.constant 0 : index
    %c0_8 = arith.constant 0 : index
    %12 = vector.load %arg4[%c0_7, %c0_8] : memref<128x128xbf16, #tpu.memory_space<vmem>>, vector<128x128xbf16>
    %cst_9 = arith.constant dense<0.000000e+00> : vector<8x128xf32>
    %13 = tpu.matmul %11, %12, %cst_9 {dimension_numbers = #tpu.dot_dimension_numbers<[1], [0], [0], [1], [0, 0, 1, 1], [], []>} : vector<8x128xbf16>, vector<128x128xbf16>, vector<8x128xf32> -> vector<8x128xf32>
    %c0_10 = arith.constant 0 : index
    %c0_11 = arith.constant 0 : index
    %14 = vector.load %arg5[%c0_10, %c0_11] : memref<1x128xf32, #tpu.memory_space<vmem>>, vector<1x128xf32>
    %15 = vector.broadcast %14 : vector<1x128xf32> to vector<8x128xf32>
    %16 = arith.addf %13, %15 : vector<8x128xf32>
    %cst_12 = arith.constant 0.000000e+00 : f32
    %17 = vector.broadcast %cst_12 : f32 to vector<8x128xf32>
    %18 = arith.cmpf ogt, %16, %17 : vector<8x128xf32>
    %cst_13 = arith.constant 2.000000e-01 : f32
    %19 = vector.broadcast %cst_13 : f32 to vector<8x128xf32>
    %20 = arith.mulf %19, %16 : vector<8x128xf32>
    %21 = arith.select %18, %16, %20 : vector<8x128xi1>, vector<8x128xf32>
    %c0_14 = arith.constant 0 : index
    %c0_15 = arith.constant 0 : index
    %22 = vector.load %arg6[%c0_14, %c0_15] : memref<1x128xf32, #tpu.memory_space<vmem>>, vector<1x128xf32>
    %23 = vector.broadcast %22 : vector<1x128xf32> to vector<8x128xf32>
    %24 = arith.mulf %21, %23 : vector<8x128xf32>
    %cst_16 = arith.constant dense<0.000000e+00> : vector<8xf32>
    %25 = vector.multi_reduction <add>, %24, %cst_16 [1] : vector<8x128xf32> to vector<8xf32>
    %26 = vector.shape_cast %25 : vector<8xf32> to vector<8x1xf32>
    %c0_17 = arith.constant 0 : index
    %c0_18 = arith.constant 0 : index
    %27 = vector.load %arg7[%c0_17, %c0_18] : memref<1x1xf32, #tpu.memory_space<vmem>>, vector<1x1xf32>
    %28 = vector.broadcast %27 : vector<1x1xf32> to vector<8x1xf32>
    %29 = arith.addf %26, %28 : vector<8x1xf32>
    %cst_19 = arith.constant 0.000000e+00 : f32
    %30 = vector.broadcast %cst_19 : f32 to vector<8x1xf32>
    %31 = arith.subf %30, %29 : vector<8x1xf32>
    %32 = math.exp %31 : vector<8x1xf32>
    %cst_20 = arith.constant 1.000000e+00 : f32
    %33 = vector.broadcast %cst_20 : f32 to vector<8x1xf32>
    %34 = arith.addf %33, %32 : vector<8x1xf32>
    %35 = tpu.reciprocal %34 {approx = true} : vector<8x1xf32> -> vector<8x1xf32>
    %c0_21 = arith.constant 0 : index
    %c0_22 = arith.constant 0 : index
    %36 = vector.load %arg8[%c0_21, %c0_22] : memref<8x1xf32, #tpu.memory_space<vmem>>, vector<8x1xf32>
    tpu.vector_store %arg8[%c0_21, %c0_22], %35 {strides = array<i32>} : memref<8x1xf32, #tpu.memory_space<vmem>>, vector<8x1xf32>,
    return
  }
  func.func @transform_0(%arg0: i32) -> (i32, i32) {
    %c0_i32 = arith.constant 0 : i32
    %c0_i32_0 = arith.constant 0 : i32
    return %arg0, %c0_i32 : i32, i32
  }
  func.func @transform_1(%arg0: i32) -> (i32, i32) {
    %c0_i32 = arith.constant 0 : i32
    %c0_i32_0 = arith.constant 0 : i32
    %c0_i32_1 = arith.constant 0 : i32
    return %c0_i32, %c0_i32_0 : i32, i32
  }
  func.func @transform_2(%arg0: i32) -> (i32, i32) {
    %c0_i32 = arith.constant 0 : i32
    %c0_i32_0 = arith.constant 0 : i32
    %c0_i32_1 = arith.constant 0 : i32
    return %c0_i32, %c0_i32_0 : i32, i32
  }
  func.func @transform_3(%arg0: i32) -> (i32, i32) {
    %c0_i32 = arith.constant 0 : i32
    %c0_i32_0 = arith.constant 0 : i32
    %c0_i32_1 = arith.constant 0 : i32
    return %c0_i32, %c0_i32_0 : i32, i32
  }
  func.func @transform_4(%arg0: i32) -> (i32, i32) {
    %c0_i32 = arith.constant 0 : i32
    %c0_i32_0 = arith.constant 0 : i32
    %c0_i32_1 = arith.constant 0 : i32
    return %c0_i32, %c0_i32_0 : i32, i32
  }
  func.func @transform_5(%arg0: i32) -> (i32, i32) {
    %c0_i32 = arith.constant 0 : i32
    %c0_i32_0 = arith.constant 0 : i32
    %c0_i32_1 = arith.constant 0 : i32
    return %c0_i32, %c0_i32_0 : i32, i32
  }
  func.func @transform_6(%arg0: i32) -> (i32, i32) {
    %c0_i32 = arith.constant 0 : i32
    %c0_i32_0 = arith.constant 0 : i32
    %c0_i32_1 = arith.constant 0 : i32
    return %c0_i32, %c0_i32_0 : i32, i32
  }
  func.func @transform_7(%arg0: i32) -> (i32, i32) {
    %c0_i32 = arith.constant 0 : i32
    %c0_i32_0 = arith.constant 0 : i32
    return %arg0, %c0_i32 : i32, i32
  }
}

</mosaic_0001>

<bundles_post_ra>
// kernel: discriminator_forward.1
= control target key start
LH: loop header
LB: loop body
LE: loop exit
PB: predicated region body
PF: predicated region fallthrough
CT: control target
= control target key end

     0   :  { %vm1175_vm0 = vmmov 0   ;;  %vm881_vm3 = vcmask 7168   ;;  %s1459_s1 = inlined_call_operand.vmem [shape: bf16[1024,128], index: 1, kind: input, shape index: {}]   ;;  %s1460_s0 = inlined_call_operand.vmem [shape: bf16[8,1024], index: 0, kind: input, shape index: {}]   ;;  %s1461_s3 = inlined_call_operand.vmem [shape: bf16[128,128], index: 3, kind: input, shape index: {}]   ;;  %s1462_s2 = inlined_call_operand.vmem [shape: f32[1,128], index: 2, kind: input, shape index: {}]   ;;  %s1463_s6 = inlined_call_operand.<no memory space> [shape: f32[1,1], index: 6, kind: input, shape index: {}]   ;;  %s1464_s4 = inlined_call_operand.vmem [shape: f32[1,128], index: 4, kind: input, shape index: {}]   ;;  %s1465_s5 = inlined_call_operand.vmem [shape: f32[1,128], index: 5, kind: input, shape index: {}]   ;;  %s1466_s7 = inlined_call_operand.vmem [shape: f32[8,1], index: 7, kind: output, shape index: {}]  }
   0x1   :  { %v1090_v0 = vld [vmem:[%s1459_s1 + $0x40] sm:$0xff]   ;;  %v1094_v4 = vld [vmem:[%s1459_s1 + $0x48] sm:$0xff]   ;;  %v1098_v8 = vld [vmem:[%s1459_s1 + $0x50] sm:$0xff]  }
   0x2   :  { %v1091_v1 = vld [vmem:[%s1459_s1 + $0xc0] sm:$0xff]   ;;  %971 = vmatprep.subr.bf16.mxu0 %v1090_v0  ;;  %v1095_v5 = vld [vmem:[%s1459_s1 + $0xc8] sm:$0xff]   ;;  %v1099_v9 = vld [vmem:[%s1459_s1 + $0xd0] sm:$0xff]  }
   0x3   :  { %v1092_v2 = vld [vmem:[%s1459_s1] sm:$0xff]   ;;  %993 = vmatprep.subr.bf16.mxu1 %v1091_v1  ;;  %v1096_v6 = vld [vmem:[%s1459_s1 + $0x8] sm:$0xff]   ;;  %v1100_v10 = vld [vmem:[%s1459_s1 + $0x10] sm:$0xff]  }
   0x4   :  { %v1093_v3 = vld [vmem:[%s1459_s1 + $0x80] sm:$0xff]   ;;  %972 = vmatpush3.bf16.msra.mxu0 %v1092_v2  ;;  %v1097_v7 = vld [vmem:[%s1459_s1 + $0x88] sm:$0xff]   ;;  %v1101_v11 = vld [vmem:[%s1459_s1 + $0x90] sm:$0xff]  }
   0x5   :  { %994 = vmatpush3.bf16.msra.mxu1 %v1093_v3  ;;  %973 = vmatprep.subr.bf16.mxu0 %v1094_v4  ;;  %v1102_v12 = vld [vmem:[%s1459_s1 + $0x58] sm:$0xff]   ;;  %v1106_v16 = vld [vmem:[%s1459_s1 + $0x60] sm:$0xff]   ;;  %v1110_v20 = vld [vmem:[%s1459_s1 + $0x68] sm:$0xff]  }
   0x6   :  { %995 = vmatprep.subr.bf16.mxu1 %v1095_v5  ;;  %v1103_v13 = vld [vmem:[%s1459_s1 + $0xd8] sm:$0xff]   ;;  %v1107_v17 = vld [vmem:[%s1459_s1 + $0xe0] sm:$0xff]   ;;  %v1111_v21 = vld [vmem:[%s1459_s1 + $0xe8] sm:$0xff]  }
   0x7   :  { %v1104_v14 = vld [vmem:[%s1459_s1 + $0x18] sm:$0xff]   ;;  %v1108_v18 = vld [vmem:[%s1459_s1 + $0x20] sm:$0xff]   ;;  %v1112_v22 = vld [vmem:[%s1459_s1 + $0x28] sm:$0xff]  }
   0x8   :  { %974 = vmatpush3.bf16.msra.mxu0 %v1096_v6  ;;  %v1105_v15 = vld [vmem:[%s1459_s1 + $0x98] sm:$0xff]   ;;  %v1109_v19 = vld [vmem:[%s1459_s1 + $0xa0] sm:$0xff]   ;;  %v1113_v23 = vld [vmem:[%s1459_s1 + $0xa8] sm:$0xff]  }
   0x9   :  { %996 = vmatpush3.bf16.msra.mxu1 %v1097_v7  ;;  %975 = vmatprep.subr.bf16.mxu0 %v1098_v8  ;;  %v1114_v24 = vld [vmem:[%s1459_s1 + $0x70] sm:$0xff]   ;;  %v1118_v28 = vld [vmem:[%s1459_s1 + $0x78] sm:$0xff]   ;;  %v29_v32 = vld [vmem:[%s1460_s0] sm:$0xff] }
   0xa   :  { %997 = vmatprep.subr.bf16.mxu1 %v1099_v9  ;;  %v1115_v25 = vld [vmem:[%s1459_s1 + $0xf0] sm:$0xff]   ;;  %v1119_v29 = vld [vmem:[%s1459_s1 + $0xf8] sm:$0xff]   ;;  %v30_v33 = vld [vmem:[%s1460_s0 + $0x8] sm:$0xff]  ;;  %v888_v34 = vcombine.low %v29_v32, %v29_v32  ;;  %v889_v35 = vcombine.high %v29_v32, %v29_v32 }
   0xb   :  { %v1116_v26 = vld [vmem:[%s1459_s1 + $0x30] sm:$0xff]   ;;  %v1120_v30 = vld [vmem:[%s1459_s1 + $0x38] sm:$0xff]   ;;  %v890_v36 = vcombine.low %v30_v33, %v30_v33  ;;  %v891_v37 = vcombine.high %v30_v33, %v30_v33  ;;  %v1126_v38 = vld [vmem:[%s1459_s1 + $0x140] sm:$0xff]  }
   0xc   :  { %976 = vmatpush3.bf16.msra.mxu0 %v1100_v10  ;;  %v1117_v27 = vld [vmem:[%s1459_s1 + $0xb0] sm:$0xff]   ;;  %v1121_v31 = vld [vmem:[%s1459_s1 + $0xb8] sm:$0xff]   ;;  %v1127_v39 = vld [vmem:[%s1459_s1 + $0x1c0] sm:$0xff]   ;;  %612 = vmatprep.mubr.bf16.mxu0 %v889_v35 }
   0xd   :  { %998 = vmatpush3.bf16.msra.mxu1 %v1101_v11  ;;  %977 = vmatprep.subr.bf16.mxu0 %v1102_v12  ;;  %v1128_v40 = vld [vmem:[%s1459_s1 + $0x100] sm:$0xff]   ;;  %v1130_v42 = vld [vmem:[%s1459_s1 + $0x148] sm:$0xff]   ;;  %v1134_v46 = vld [vmem:[%s1459_s1 + $0x150] sm:$0xff]   ;;  %v1174_v12 = vmov 0.0  }
   0xe   :  { %999 = vmatprep.subr.bf16.mxu1 %v1103_v13  ;;  %652 = vmatprep.mubr.bf16.mxu1 %v891_v37  ;;  %v1129_v41 = vld [vmem:[%s1459_s1 + $0x180] sm:$0xff]   ;;  %v1131_v43 = vld [vmem:[%s1459_s1 + $0x1c8] sm:$0xff]   ;;  %v1135_v47 = vld [vmem:[%s1459_s1 + $0x1d0] sm:$0xff]  }
   0xf   :  { %v1132_v44 = vld [vmem:[%s1459_s1 + $0x108] sm:$0xff]   ;;  %v1136_v48 = vld [vmem:[%s1459_s1 + $0x110] sm:$0xff]   ;;  %v1138_v50 = vld [vmem:[%s1459_s1 + $0x158] sm:$0xff]  }
  0x10   :  { %978 = vmatpush3.bf16.msra.mxu0 %v1104_v14  ;;  %v1133_v45 = vld [vmem:[%s1459_s1 + $0x188] sm:$0xff]   ;;  %v1137_v49 = vld [vmem:[%s1459_s1 + $0x190] sm:$0xff]   ;;  %v1139_v51 = vld [vmem:[%s1459_s1 + $0x1d8] sm:$0xff]  }
  0x11   :  { %1000 = vmatpush3.bf16.msra.mxu1 %v1105_v15  ;;  %979 = vmatprep.subr.bf16.mxu0 %v1106_v16  ;;  %v1140_v52 = vld [vmem:[%s1459_s1 + $0x118] sm:$0xff]   ;;  %v1142_v54 = vld [vmem:[%s1459_s1 + $0x160] sm:$0xff]   ;;  %v1146_v58 = vld [vmem:[%s1459_s1 + $0x168] sm:$0xff]  }
  0x12   :  { %1001 = vmatprep.subr.bf16.mxu1 %v1107_v17  ;;  %v1141_v53 = vld [vmem:[%s1459_s1 + $0x198] sm:$0xff]   ;;  %v1143_v55 = vld [vmem:[%s1459_s1 + $0x1e0] sm:$0xff]   ;;  %v1147_v59 = vld [vmem:[%s1459_s1 + $0x1e8] sm:$0xff]  }
  0x13   :  { %v1144_v56 = vld [vmem:[%s1459_s1 + $0x120] sm:$0xff]   ;;  %v1148_v60 = vld [vmem:[%s1459_s1 + $0x128] sm:$0xff]   ;;  %v1150_v62 = vld [vmem:[%s1459_s1 + $0x170] sm:$0xff]  }
  0x14   :  { %980 = vmatpush3.bf16.msra.mxu0 %v1108_v18  ;;  %v1145_v57 = vld [vmem:[%s1459_s1 + $0x1a0] sm:$0xff]   ;;  %v1149_v61 = vld [vmem:[%s1459_s1 + $0x1a8] sm:$0xff]   ;;  %v1151_v63 = vld [vmem:[%s1459_s1 + $0x1f0] sm:$0xff]  }
  0x15   :  { %1002 = vmatpush3.bf16.msra.mxu1 %v1109_v19  ;;  %981 = vmatprep.subr.bf16.mxu0 %v1110_v20  ;;  %v1152_v0 = vld [vmem:[%s1459_s1 + $0x130] sm:$0xff]   ;;  %v1154_v2 = vld [vmem:[%s1459_s1 + $0x178] sm:$0xff]   ;;  %v1162_v13 = vld [vmem:[%s1461_s3] sm:$0xff]  }
  0x16   :  { %1003 = vmatprep.subr.bf16.mxu1 %v1111_v21  ;;  %v1153_v1 = vld [vmem:[%s1459_s1 + $0x1b0] sm:$0xff]   ;;  %v1155_v3 = vld [vmem:[%s1459_s1 + $0x1f8] sm:$0xff]   ;;  %v1163_v14 = vld [vmem:[%s1461_s3 + $0x8] sm:$0xff]  }
  0x17   :  { %v1156_v4 = vld [vmem:[%s1459_s1 + $0x138] sm:$0xff]   ;;  %v31_v6 = vld [vmem:[%s1460_s0 + $0x10] sm:$0xff]  ;;  %v1166_v17 = vld [vmem:[%s1461_s3 + $0x20] sm:$0xff]  }
  0x18   :  { %982 = vmatpush3.bf16.msra.mxu0 %v1112_v22  ;;  %v1157_v5 = vld [vmem:[%s1459_s1 + $0x1b8] sm:$0xff]   ;;  %v892_v7 = vcombine.low %v31_v6, %v31_v6  ;;  %v893_v8 = vcombine.high %v31_v6, %v31_v6  ;;  %v1164_v15 = vld [vmem:[%s1461_s3 + $0x10] sm:$0xff]   ;;  %v1167_v18 = vld [vmem:[%s1461_s3 + $0x28] sm:$0xff]  }
  0x19   :  { %1004 = vmatpush3.bf16.msra.mxu1 %v1113_v23  ;;  %983 = vmatprep.subr.bf16.mxu0 %v1114_v24  ;;  %v32_v9 = vld [vmem:[%s1460_s0 + $0x18] sm:$0xff]  ;;  %v1168_v19 = vld [vmem:[%s1461_s3 + $0x30] sm:$0xff]   ;;  %v887_v23 = vld [vmem:[%s1462_s2] ss:$0 sm:$0xff] }
  0x1a   :  { %1005 = vmatprep.subr.bf16.mxu1 %v1115_v25  ;;  %v894_v10 = vcombine.low %v32_v9, %v32_v9  ;;  %v895_v11 = vcombine.high %v32_v9, %v32_v9  ;;  %v1165_v16 = vld [vmem:[%s1461_s3 + $0x18] sm:$0xff]  }
  0x1b   :  { %v1169_v20 = vld [vmem:[%s1461_s3 + $0x38] sm:$0xff]  }
  0x1c   :  { %984 = vmatpush3.bf16.msra.mxu0 %v1116_v26 }
  0x1d   :  { %1006 = vmatpush3.bf16.msra.mxu1 %v1117_v27  ;;  %985 = vmatprep.subr.bf16.mxu0 %v1118_v28 }
  0x1e   :  { %1007 = vmatprep.subr.bf16.mxu1 %v1119_v29 }
  0x20   :  { %986 = vmatpush3.bf16.msra.mxu0 %v1120_v30 }
  0x21   :  { %1008 = vmatpush3.bf16.msra.mxu1 %v1121_v31  ;;  %1015 = vmatprep.subr.bf16.mxu0 %v1126_v38 }
  0x22   :  { %1037 = vmatprep.subr.bf16.mxu1 %v1127_v39 }
  0x23   :  { %613 = vmatmul.mubr.bf16.vlgmr.msra.gmra.mrb[0].mxu0 %v888_v34 }
  0x24   :  { %653 = vmatmul.mubr.bf16.vlgmr.msra.gmra.mrb[0].mxu1 %v890_v36  ;;  %1016 = vmatpush3.bf16.msra.mxu0 %v1128_v40 }
  0x25   :  { %1038 = vmatpush3.bf16.msra.mxu1 %v1129_v41  ;;  %1017 = vmatprep.subr.bf16.mxu0 %v1130_v42 }
  0x26   :  { %1039 = vmatprep.subr.bf16.mxu1 %v1131_v43  ;;  %692 = vmatprep.mubr.bf16.mxu0 %v893_v8 }
  0x27   :  { %732 = vmatprep.mubr.bf16.mxu1 %v895_v11 }
  0x28   :  { %1018 = vmatpush3.bf16.msra.mxu0 %v1132_v44 }
  0x29   :  { %1040 = vmatpush3.bf16.msra.mxu1 %v1133_v45  ;;  %1019 = vmatprep.subr.bf16.mxu0 %v1134_v46 }
  0x2a   :  { %1041 = vmatprep.subr.bf16.mxu1 %v1135_v47 }
  0x2c   :  { %1020 = vmatpush3.bf16.msra.mxu0 %v1136_v48 }
  0x2d   :  { %1042 = vmatpush3.bf16.msra.mxu1 %v1137_v49  ;;  %1021 = vmatprep.subr.bf16.mxu0 %v1138_v50  ;;  %v12_v49 = vstv %s1463_s6  ;;  %v960_v50 = vld [vmem:[%s1464_s4] ss:$0 sm:$0xff] }
  0x2e   :  { %1043 = vmatprep.subr.bf16.mxu1 %v1139_v51  ;;  %13 = vst [vmem:[#allocation2] sm:$0x1] %v12_v49 }
  0x30   :  { %1022 = vmatpush3.bf16.msra.mxu0 %v1140_v52 }
  0x31   :  { %1044 = vmatpush3.bf16.msra.mxu1 %v1141_v53  ;;  %1023 = vmatprep.subr.bf16.mxu0 %v1142_v54 }
  0x32   :  { %1045 = vmatprep.subr.bf16.mxu1 %v1143_v55 }
  0x34   :  { %1024 = vmatpush3.bf16.msra.mxu0 %v1144_v56 }
  0x35   :  { %1046 = vmatpush3.bf16.msra.mxu1 %v1145_v57  ;;  %1025 = vmatprep.subr.bf16.mxu0 %v1146_v58  ;;  %v969_v57 = vld [vmem:[%s1465_s5] ss:$0 sm:$0xff] }
  0x36   :  { %1047 = vmatprep.subr.bf16.mxu1 %v1147_v59 }
  0x38   :  { %1026 = vmatpush3.bf16.msra.mxu0 %v1148_v60  ;;  %v970_v60 = vld [vmem:[#allocation2] ss:$0 sm:$0xff] }
  0x39   :  { %1048 = vmatpush3.bf16.msra.mxu1 %v1149_v61  ;;  %1027 = vmatprep.subr.bf16.mxu0 %v1150_v62 }
  0x3a   :  { %1049 = vmatprep.subr.bf16.mxu1 %v1151_v63 }
  0x3c   :  { %1028 = vmatpush3.bf16.msra.mxu0 %v1152_v0 }
  0x3d   :  { %1050 = vmatpush3.bf16.msra.mxu1 %v1153_v1  ;;  %1029 = vmatprep.subr.bf16.mxu0 %v1154_v2 }
  0x3e   :  { %1051 = vmatprep.subr.bf16.mxu1 %v1155_v3 }
  0x40   :  { %1030 = vmatpush3.bf16.msra.mxu0 %v1156_v4 }
  0x41   :  { %1052 = vmatpush3.bf16.msra.mxu1 %v1157_v5  ;;  %1068 = vmatprep.subr.bf16.mxu0 %v1174_v12 }
  0x43   :  { %693 = vmatmul.mubr.bf16.vlgmr.msra.gmra.mrb[4].mxu0 %v892_v7 }
  0x44   :  { %733 = vmatmul.mubr.bf16.vlgmr.msra.gmra.mrb[4].mxu1 %v894_v10  ;;  %1069 = vmatpush3.bf16.msra.mxu0 %v1162_v13 }
  0x45   :  { %1070 = vmatprep.subr.bf16.mxu0 %v1174_v12  ;;  %1084 = vmatprep.mubr.msk.bf16.mxu0 %vm1175_vm0, %v1174_v12 }
  0x48   :  { %1071 = vmatpush3.bf16.msra.mxu0 %v1163_v14 }
  0x49   :  { %1072 = vmatprep.subr.bf16.mxu0 %v1174_v12 }
  0x4c   :  { %1073 = vmatpush3.bf16.msra.mxu0 %v1164_v15 }
  0x4d   :  { %1074 = vmatprep.subr.bf16.mxu0 %v1174_v12 }
  0x50   :  { %1075 = vmatpush3.bf16.msra.mxu0 %v1165_v16 }
  0x51   :  { %1076 = vmatprep.subr.bf16.mxu0 %v1174_v12 }
  0x54   :  { %1077 = vmatpush3.bf16.msra.mxu0 %v1166_v17 }
  0x55   :  { %1078 = vmatprep.subr.bf16.mxu0 %v1174_v12 }
  0x58   :  { %1079 = vmatpush3.bf16.msra.mxu0 %v1167_v18 }
  0x59   :  { %1080 = vmatprep.subr.bf16.mxu0 %v1174_v12 }
  0x5c   :  { %1081 = vmatpush3.bf16.msra.mxu0 %v1168_v19 }
  0x5d   :  { %1082 = vmatprep.subr.bf16.mxu0 %v1174_v12 }
  0x60   :  { %1083 = vmatpush3.bf16.msra.mxu0 %v1169_v20 }
  0xf6   :  { %v987_v21 = vpop.f32.mrb[0].mxu0 }
  0xf7   :  { %v1009_v22 = vpop.f32.mrb[0].mxu1  ;;  %v988_v24 = vpop.f32.mrb[1].mxu0 }
  0xf8   :  { %v1010_v25 = vpop.f32.mrb[1].mxu1  ;;  %v989_v26 = vadd.f32 %v988_v24, %v987_v21  ;;  %v990_v28 = vpop.f32.mrb[2].mxu0 }
  0xf9   :  { %v1011_v27 = vadd.f32 %v1010_v25, %v1009_v22  ;;  %v1012_v29 = vpop.f32.mrb[2].mxu1  ;;  %v991_v30 = vpop.f32.mrb[3].mxu0 }
  0xfa   :  { %v1013_v31 = vpop.f32.mrb[3].mxu1  ;;  %v615_v32 = vadd.f32 %v989_v26, %v887_v23 }
  0xfc   :  { %v655_v33 = vadd.f32 %v1011_v27, %v615_v32 }
 0x116   :  { %v1031_v34 = vpop.f32.mrb[4].mxu0 }
 0x117   :  { %v1053_v35 = vpop.f32.mrb[4].mxu1  ;;  %v1032_v36 = vpop.f32.mrb[5].mxu0 }
 0x118   :  { %v1054_v37 = vpop.f32.mrb[5].mxu1  ;;  %v1033_v38 = vadd.f32 %v1032_v36, %v1031_v34  ;;  %v1034_v40 = vpop.f32.mrb[6].mxu0 }
 0x119   :  { %v1055_v39 = vadd.f32 %v1054_v37, %v1053_v35  ;;  %v1056_v41 = vpop.f32.mrb[6].mxu1  ;;  %v1035_v42 = vpop.f32.mrb[7].mxu0 }
 0x11a   :  { %v1057_v43 = vpop.f32.mrb[7].mxu1  ;;  %v695_v44 = vadd.f32 %v1033_v38, %v655_v33 }
 0x11c   :  { %v735_v45 = vadd.f32 %v1055_v39, %v695_v44 }
 0x11e   :  { %vm740_vm1 = vcmp.gt.f32.partialorder %v735_v45, 0.0  ;;  %v741_v46 = vmul.f32 0.2, %v735_v45 }
 0x120   :  { %v742_v47 = vsel %vm740_vm1, %v735_v45, %v741_v46 }
 0x121   :  { %v743_v48 = vpack.c.bf16 %v742_v47, %v742_v47 }
 0x123   :  { %1085 = vmatmul.mubr.bf16.vlgmr.msra.gmra.mrb[8].mxu0 %v743_v48 }
 0x1f6   :  { %v849_v51 = vpop.f32.mrb[8].mxu0 }
 0x1f7   :  { %v850_v52 = vadd.f32 %v960_v50, %v849_v51  ;;  %v1086_v53 = vpop.f32.mrb[9].mxu0 }
 0x1f8   :  { %v852_v54 = vpop.f32.mrb[10].mxu0 }
 0x1f9   :  { %v856_v55 = vmul.f32 0.2, %v850_v52  ;;  %v1087_v56 = vpop.f32.mrb[11].mxu0  ;;  %vm855_vm2 = vcmp.gt.f32.partialorder %v850_v52, 0.0 }
 0x1fb   :  { %v857_v58 = vsel %vm855_vm2, %v850_v52, %v856_v55 }
 0x1fc   :  { %v865_v59 = vmul.f32 %v969_v57, %v857_v58 }
 0x1fe   :  { %866 = vadd.xlane.f32.xlu0 %v865_v59 }
 0x28b   :  { %v867_v61 = vpop.xlane.xlu0 %866 }
 0x28c   :  { %v875_v62 = vadd.f32 %v970_v60, %v867_v61 }
 0x28e   :  { %v876_v63 = vsub.f32 0.0, %v875_v62 }
 0x290   :  { %v877_v0 = vmul.f32 1.442695, %v876_v63 }
 0x292   :  { %1170 = vpow2.f32 %v877_v0 }
 0x29c   :  { %v1171_v1 = vpop.eup %1170 }
 0x29d   :  { %v879_v2 = vadd.f32 1.0, %v1171_v1 }
 0x29f   :  { %1172 = vrcp.f32 %v879_v2 }
 0x2a9   :  { %v1173_v3 = vpop.eup %1172 }
 0x2aa   :  { %882 = vst.msk [vmem:[%s1466_s7] sm:$0xff] %vm881_vm3, %v1173_v3 }

</bundles_post_ra>
